<compile_context>
chip_gen: v5e
topology: v5e:2x2
jax: 0.10.0
libtpu: 0.0.40
codegen_flags: <defaults>
</compile_context>

<pallas_src>
import functools

import jax
import jax.numpy as jnp
import numpy as np
from jax import lax
from jax.experimental import pallas as pl
from jax.experimental.pallas import tpu as pltpu

EPS = 1e-5


def _round_up(v, m):
    return ((v + m - 1) // m) * m


# --------------------------------------------------------------------------
# In-kernel helpers
# --------------------------------------------------------------------------
def _store_stats(st_ref, z):
    """Write per-channel [sum ; sum_of_squares] of z (rows, C) as one partial tile."""
    st = jnp.concatenate(
        [jnp.sum(z, axis=0, keepdims=True),
         jnp.sum(z * z, axis=0, keepdims=True)], axis=0)
    st_ref[...] = st.reshape(st_ref.shape)


# --------------------------------------------------------------------------
# Pallas kernels
# --------------------------------------------------------------------------
def conv1_stats_kernel(x_ref, w1_ref, st_ref, *, tm, m_true):
    # pass 1: partial BN1 statistics of z1 = x @ W1 for one M-row tile.
    i = pl.program_id(0)
    valid = (i * tm + lax.broadcasted_iota(jnp.int32, (tm, 1), 0)) < m_true
    x = jnp.where(valid, x_ref[...], 0.0)                      # bf16, tail masked
    z1 = jnp.dot(x, w1_ref[...], preferred_element_type=jnp.float32)
    _store_stats(st_ref, z1)


def stage2_kernel(x_ref, w1_ref, s1_ref, t1_ref, w2_ref,
                  z2_ref, st2_ref, y1pad_ref, *, hh, ww, ho, wo, stride):
    # pass 2 (one image per grid step): recompute y1 = relu(bn1(conv1(x))) in
    # VMEM (stage 1 fused, never hits HBM), write it into a zero-haloed bf16
    # scratch whose interior starts at sublane-aligned column 8, then run 9
    # accumulating tap matmuls for the grouped 3x3 conv (block-diagonal per-tap
    # weights).  Emits bf16 z2 and partial BN2 statistics.  The halo border is
    # re-zeroed every step, so there is no cross-step scratch state and the
    # batch axis can be marked "parallel" (v7x megacore).
    cin = x_ref.shape[-1]
    cmid = w1_ref.shape[1]
    wpad = y1pad_ref.shape[1]
    bdt = y1pad_ref.dtype

    # fused stage 1
    x = x_ref[...].reshape(hh * ww, cin)                       # bf16
    z1 = jnp.dot(x, w1_ref[...], preferred_element_type=jnp.float32)
    y1 = jnp.maximum(z1 * s1_ref[...] + t1_ref[...], 0.0)

    # re-zero only the thin halo border (interior fully overwritten below)
    y1pad_ref[0:1, :, :] = jnp.zeros((1, wpad, cmid), bdt)
    y1pad_ref[hh + 1:hh + 2, :, :] = jnp.zeros((1, wpad, cmid), bdt)
    y1pad_ref[:, 0:8, :] = jnp.zeros((hh + 2, 8, cmid), bdt)
    y1pad_ref[:, 8 + ww:, :] = jnp.zeros((hh + 2, wpad - 8 - ww, cmid), bdt)
    # sublane-aligned interior write (left halo column lives at index 7)
    y1pad_ref[1:hh + 1, 8:8 + ww, :] = y1.reshape(hh, ww, cmid).astype(bdt)

    y1p = y1pad_ref[...]                                       # bf16 halo buffer
    span_h = (ho - 1) * stride + 1
    span_w = (wo - 1) * stride + 1
    acc = None
    for kh in range(3):
        for kw in range(3):
            tap = y1p[kh:kh + span_h:stride,
                      7 + kw:7 + kw + span_w:stride, :].reshape(ho * wo, cmid)
            part = jnp.dot(tap, w2_ref[kh * 3 + kw],
                           preferred_element_type=jnp.float32)
            acc = part if acc is None else acc + part

    z2_ref[...] = acc.reshape(1, ho, wo, cmid).astype(z2_ref.dtype)
    _store_stats(st2_ref, acc)                                 # stats from f32 acc


def stage3_stats_kernel(z2_ref, w3_ref, s2_ref, t2_ref, st3_ref, *, tm, m_true):
    # pass 3 (identity shortcut): partial BN3 stats of z3 = conv3(relu(bn2(z2))).
    i = pl.program_id(0)
    valid = (i * tm + lax.broadcasted_iota(jnp.int32, (tm, 1), 0)) < m_true
    z2 = z2_ref[...].astype(jnp.float32)
    y2 = jnp.where(valid, jnp.maximum(z2 * s2_ref[...] + t2_ref[...], 0.0), 0.0)
    z3 = jnp.dot(y2.astype(jnp.bfloat16), w3_ref[...],
                 preferred_element_type=jnp.float32)
    _store_stats(st3_ref, z3)


def stage3_stats_proj_kernel(z2_ref, w3_ref, s2_ref, t2_ref, xsc_ref, wsc_ref,
                             st3_ref, stsc_ref, *, tm, m_true):
    # pass 3 (projection shortcut): BN3 stats + shortcut-BN stats in one sweep.
    # TODO(synk): a Gram-matrix (Y2^T Y2) formulation would cut this pass's MXU
    #             flops by exp/planes; kept as a plain recompute for clarity.
    i = pl.program_id(0)
    valid = (i * tm + lax.broadcasted_iota(jnp.int32, (tm, 1), 0)) < m_true
    z2 = z2_ref[...].astype(jnp.float32)
    y2 = jnp.where(valid, jnp.maximum(z2 * s2_ref[...] + t2_ref[...], 0.0), 0.0)
    z3 = jnp.dot(y2.astype(jnp.bfloat16), w3_ref[...],
                 preferred_element_type=jnp.float32)
    _store_stats(st3_ref, z3)
    xsc = jnp.where(valid, xsc_ref[...], 0.0)                  # bf16
    zsc = jnp.dot(xsc, wsc_ref[...], preferred_element_type=jnp.float32)
    _store_stats(stsc_ref, zsc)


def head_proj_kernel(z2_ref, w3_ref, s2_ref, t2_ref, s3_ref, t3_ref,
                     xsc_ref, wsc_ref, ssc_ref, tsc_ref, o_ref):
    # pass 4: bn2-apply + conv3 + bn3-apply + (conv_sc + bn_sc) + add + relu.
    z2 = z2_ref[...].astype(jnp.float32)
    y2 = jnp.maximum(z2 * s2_ref[...] + t2_ref[...], 0.0)
    z3 = jnp.dot(y2.astype(jnp.bfloat16), w3_ref[...],
                 preferred_element_type=jnp.float32)
    main = z3 * s3_ref[...] + t3_ref[...]
    zsc = jnp.dot(xsc_ref[...], wsc_ref[...], preferred_element_type=jnp.float32)
    sc = zsc * ssc_ref[...] + tsc_ref[...]
    o_ref[...] = jnp.maximum(main + sc, 0.0).astype(o_ref.dtype)


def head_identity_kernel(z2_ref, w3_ref, s2_ref, t2_ref, s3_ref, t3_ref,
                         xsc_ref, o_ref):
    z2 = z2_ref[...].astype(jnp.float32)
    y2 = jnp.maximum(z2 * s2_ref[...] + t2_ref[...], 0.0)
    z3 = jnp.dot(y2.astype(jnp.bfloat16), w3_ref[...],
                 preferred_element_type=jnp.float32)
    main = z3 * s3_ref[...] + t3_ref[...]
    o_ref[...] = jnp.maximum(main + xsc_ref[...].astype(jnp.float32),
                             0.0).astype(o_ref.dtype)


# --------------------------------------------------------------------------
# Host-side parameter preparation (hoisted out of any traced function)
# --------------------------------------------------------------------------
def prepare_params(params, *, in_planes, planes, path):
    exp = params["w3"].shape[1]
    cg = planes // path

    # grouped 3x3 conv -> block-diagonal weight per tap, built once with numpy.
    w2 = np.asarray(params["w2"], np.float32)                  # (3, 3, path, cg, cg)
    w2taps = np.zeros((9, planes, planes), np.float32)
    for kh in range(3):
        for kw in range(3):
            for g in range(path):
                w2taps[kh * 3 + kw,
                       g * cg:(g + 1) * cg,
                       g * cg:(g + 1) * cg] = w2[kh, kw, g]

    bf = lambda a: jnp.asarray(a, jnp.bfloat16)
    f32 = lambda a: jnp.asarray(a, jnp.float32)
    prep = {
        "w1": bf(params["w1"]),
        "w2taps": jnp.asarray(w2taps, jnp.bfloat16),
        "w3": bf(params["w3"]),
        "g1": f32(params["g1"]), "b1": f32(params["b1"]),
        "g2": f32(params["g2"]), "b2": f32(params["b2"]),
        "g3": f32(params["g3"]), "b3": f32(params["b3"]),
    }
    if "wsc" in params:
        prep["wsc"] = bf(params["wsc"])
        prep["gsc"] = f32(params["gsc"])
        prep["bsc"] = f32(params["bsc"])
    meta = dict(cin=in_planes, planes=planes, exp=exp, path=path)
    return prep, meta


def _fold_bn(stats, count, gamma, beta, eps=EPS):
    # fold global batch statistics (biased variance) + affine into scale/shift.
    mean = stats[0] / count
    var = jnp.maximum(stats[1] / count - mean * mean, 0.0)
    scale = gamma * lax.rsqrt(var + eps)
    shift = beta - mean * scale
    return scale.reshape(1, -1), shift.reshape(1, -1)


# --------------------------------------------------------------------------
# Forward pass
# --------------------------------------------------------------------------
def bottleneck_block(x_nhwc, prep, meta, *, stride=1, tm=512):
    n, h, w, cin = x_nhwc.shape
    cmid, cexp = meta["planes"], meta["exp"]
    proj = "wsc" in prep
    ho = (h + 2 - 3) // stride + 1
    wo = (w + 2 - 3) // stride + 1
    m1, m2 = n * h * w, n * ho * wo

    if not proj:
        assert stride == 1 and cin == cexp, \
            "identity shortcut needs stride == 1 and in_planes == 4 * planes"

    x = x_nhwc.astype(jnp.bfloat16)          # bf16 activation stream in HBM

    cparams = pltpu.CompilerParams(dimension_semantics=("parallel",),
                                   vmem_limit_bytes=32 * 1024 * 1024)

    # ---- pass 1: partial BN1 statistics (M1 row tiles, parallel) ------------
    tm1 = min(tm, m1)
    steps1 = pl.cdiv(m1, tm1)
    x_flat = x.reshape(m1, cin)              # free reshape, no padding copies
    st1 = pl.pallas_call(
        functools.partial(conv1_stats_kernel, tm=tm1, m_true=m1),
        grid=(steps1,),
        in_specs=[pl.BlockSpec((tm1, cin), lambda i: (i, 0)),
                  pl.BlockSpec((cin, cmid), lambda i: (0, 0))],
        out_specs=pl.BlockSpec((1, 2, cmid), lambda i: (i, 0, 0)),
        out_shape=jax.ShapeDtypeStruct((steps1, 2, cmid), jnp.float32),
        compiler_params=cparams,
    )(x_flat, prep["w1"])
    s1, t1 = _fold_bn(st1.sum(axis=0), m1, prep["g1"], prep["b1"])

    # ---- pass 2: fused conv1+bn1+relu -> grouped 3x3 conv (tap matmuls) -----
    # TODO(synk): for large H*W feature maps, tile this pass spatially with a
    #             halo'd row window instead of one whole image per grid step.
    w_hal = _round_up(9 + w, 8)              # 8-col left halo -> aligned interior
    z2, st2 = pl.pallas_call(
        functools.partial(stage2_kernel, hh=h, ww=w, ho=ho, wo=wo, stride=stride),
        grid=(n,),
        in_specs=[pl.BlockSpec((1, h, w, cin), lambda b: (b, 0, 0, 0)),
                  pl.BlockSpec((cin, cmid), lambda b: (0, 0)),
                  pl.BlockSpec((1, cmid), lambda b: (0, 0)),
                  pl.BlockSpec((1, cmid), lambda b: (0, 0)),
                  pl.BlockSpec((9, cmid, cmid), lambda b: (0, 0, 0))],
        out_specs=[pl.BlockSpec((1, ho, wo, cmid), lambda b: (b, 0, 0, 0)),
                   pl.BlockSpec((1, 2, cmid), lambda b: (b, 0, 0))],
        out_shape=[jax.ShapeDtypeStruct((n, ho, wo, cmid), jnp.bfloat16),
                   jax.ShapeDtypeStruct((n, 2, cmid), jnp.float32)],
        scratch_shapes=[pltpu.VMEM((h + 2, w_hal, cmid), jnp.bfloat16)],
        compiler_params=cparams,
    )(x, prep["w1"], s1, t1, prep["w2taps"])
    s2, t2 = _fold_bn(st2.sum(axis=0), m2, prep["g2"], prep["b2"])

    # ---- pass 3: partial BN3 (+ projection-shortcut BN) statistics ----------
    tm2 = min(tm, m2)
    steps2 = pl.cdiv(m2, tm2)
    z2_flat = z2.reshape(m2, cmid)           # bf16, free reshape
    if proj:
        x_sc = x[:, ::stride, ::stride, :].reshape(m2, cin)
        st3, stsc = pl.pallas_call(
            functools.partial(stage3_stats_proj_kernel, tm=tm2, m_true=m2),
            grid=(steps2,),
            in_specs=[pl.BlockSpec((tm2, cmid), lambda i: (i, 0)),
                      pl.BlockSpec((cmid, cexp), lambda i: (0, 0)),
                      pl.BlockSpec((1, cmid), lambda i: (0, 0)),
                      pl.BlockSpec((1, cmid), lambda i: (0, 0)),
                      pl.BlockSpec((tm2, cin), lambda i: (i, 0)),
                      pl.BlockSpec((cin, cexp), lambda i: (0, 0))],
            out_specs=[pl.BlockSpec((1, 2, cexp), lambda i: (i, 0, 0)),
                       pl.BlockSpec((1, 2, cexp), lambda i: (i, 0, 0))],
            out_shape=[jax.ShapeDtypeStruct((steps2, 2, cexp), jnp.float32),
                       jax.ShapeDtypeStruct((steps2, 2, cexp), jnp.float32)],
            compiler_params=cparams,
        )(z2_flat, prep["w3"], s2, t2, x_sc, prep["wsc"])
        s3, t3 = _fold_bn(st3.sum(axis=0), m2, prep["g3"], prep["b3"])
        ssc, tsc = _fold_bn(stsc.sum(axis=0), m2, prep["gsc"], prep["bsc"])
    else:
        x_sc = x.reshape(m2, cexp)
        st3 = pl.pallas_call(
            functools.partial(stage3_stats_kernel, tm=tm2, m_true=m2),
            grid=(steps2,),
            in_specs=[pl.BlockSpec((tm2, cmid), lambda i: (i, 0)),
                      pl.BlockSpec((cmid, cexp), lambda i: (0, 0)),
                      pl.BlockSpec((1, cmid), lambda i: (0, 0)),
                      pl.BlockSpec((1, cmid), lambda i: (0, 0))],
            out_specs=pl.BlockSpec((1, 2, cexp), lambda i: (i, 0, 0)),
            out_shape=jax.ShapeDtypeStruct((steps2, 2, cexp), jnp.float32),
            compiler_params=cparams,
        )(z2_flat, prep["w3"], s2, t2)
        s3, t3 = _fold_bn(st3.sum(axis=0), m2, prep["g3"], prep["b3"])

    # ---- pass 4 (head): bn2-apply + conv3 + bn3-apply + shortcut + relu -----
    # TODO(synk): on v5e, add pipeline_mode=pl.Buffered(3) to the z2/x_sc
    #             streams if profiling shows exposed DMA on this pass.
    if proj:
        out = pl.pallas_call(
            head_proj_kernel,
            grid=(steps2,),
            in_specs=[pl.BlockSpec((tm2, cmid), lambda i: (i, 0)),
                      pl.BlockSpec((cmid, cexp), lambda i: (0, 0)),
                      pl.BlockSpec((1, cmid), lambda i: (0, 0)),
                      pl.BlockSpec((1, cmid), lambda i: (0, 0)),
                      pl.BlockSpec((1, cexp), lambda i: (0, 0)),
                      pl.BlockSpec((1, cexp), lambda i: (0, 0)),
                      pl.BlockSpec((tm2, cin), lambda i: (i, 0)),
                      pl.BlockSpec((cin, cexp), lambda i: (0, 0)),
                      pl.BlockSpec((1, cexp), lambda i: (0, 0)),
                      pl.BlockSpec((1, cexp), lambda i: (0, 0))],
            out_specs=pl.BlockSpec((tm2, cexp), lambda i: (i, 0)),
            out_shape=jax.ShapeDtypeStruct((m2, cexp), jnp.float32),
            compiler_params=cparams,
        )(z2_flat, prep["w3"], s2, t2, s3, t3, x_sc, prep["wsc"], ssc, tsc)
    else:
        out = pl.pallas_call(
            head_identity_kernel,
            grid=(steps2,),
            in_specs=[pl.BlockSpec((tm2, cmid), lambda i: (i, 0)),
                      pl.BlockSpec((cmid, cexp), lambda i: (0, 0)),
                      pl.BlockSpec((1, cmid), lambda i: (0, 0)),
                      pl.BlockSpec((1, cmid), lambda i: (0, 0)),
                      pl.BlockSpec((1, cexp), lambda i: (0, 0)),
                      pl.BlockSpec((1, cexp), lambda i: (0, 0)),
                      pl.BlockSpec((tm2, cexp), lambda i: (i, 0))],
            out_specs=pl.BlockSpec((tm2, cexp), lambda i: (i, 0)),
            out_shape=jax.ShapeDtypeStruct((m2, cexp), jnp.float32),
            compiler_params=cparams,
        )(z2_flat, prep["w3"], s2, t2, s3, t3, x_sc)

    # flat, lane-dense (M2, exp) output; NHWC reshape is free (no slice copy).
    return out.reshape(n, ho, wo, cexp)


# --------------------------------------------------------------------------
# Pure-JAX reference (lax.conv with matching bf16 MXU feeds) for verification
# --------------------------------------------------------------------------
def _bn_ref(y, gamma, beta, eps=EPS):
    mean = jnp.mean(y, axis=(0, 1, 2), keepdims=True)
    var = jnp.mean((y - mean) ** 2, axis=(0, 1, 2), keepdims=True)
    return (y - mean) * lax.rsqrt(var + eps) * gamma.reshape(1, 1, 1, -1) \
        + beta.reshape(1, 1, 1, -1)


def _conv_bf16(x, w, strides, padding, groups=1):
    dn = ("NHWC", "HWIO", "NHWC")
    return lax.conv_general_dilated(
        x.astype(jnp.bfloat16), w.astype(jnp.bfloat16), strides, padding,
        dimension_numbers=dn, feature_group_count=groups,
        preferred_element_type=jnp.float32)


def reference(x_nhwc, params, *, stride, path):
    planes = params["w1"].shape[1]
    w1 = params["w1"].reshape(1, 1, -1, planes)
    y = _conv_bf16(x_nhwc, w1, (1, 1), "VALID")
    y = jax.nn.relu(_bn_ref(y, params["g1"], params["b1"]))

    cg = planes // path
    w2 = params["w2"].transpose(0, 1, 3, 2, 4).reshape(3, 3, cg, planes)
    y = _conv_bf16(y, w2, (stride, stride), ((1, 1), (1, 1)), groups=path)
    y = jax.nn.relu(_bn_ref(y, params["g2"], params["b2"]))

    w3 = params["w3"].reshape(1, 1, planes, -1)
    y = _conv_bf16(y, w3, (1, 1), "VALID")
    y = _bn_ref(y, params["g3"], params["b3"])

    if "wsc" in params:
        wsc = params["wsc"].reshape(1, 1, x_nhwc.shape[-1], -1)
        sc = _conv_bf16(x_nhwc, wsc, (stride, stride), "VALID")
        sc = _bn_ref(sc, params["gsc"], params["bsc"])
    else:
        sc = x_nhwc
    return jax.nn.relu(y + sc)


# --------------------------------------------------------------------------
# Main
# --------------------------------------------------------------------------
def _make_params(key, in_planes, planes, path, with_proj):
    exp = 4 * planes
    cg = planes // path
    ks = jax.random.split(key, 12)
    p = {
        "w1": 0.1 * jax.random.normal(ks[0], (in_planes, planes), jnp.float32),
        "g1": 1.0 + 0.1 * jax.random.normal(ks[1], (planes,), jnp.float32),
        "b1": 0.1 * jax.random.normal(ks[2], (planes,), jnp.float32),
        "w2": 0.1 * jax.random.normal(ks[3], (3, 3, path, cg, cg), jnp.float32),
        "g2": 1.0 + 0.1 * jax.random.normal(ks[4], (planes,), jnp.float32),
        "b2": 0.1 * jax.random.normal(ks[5], (planes,), jnp.float32),
        "w3": 0.1 * jax.random.normal(ks[6], (planes, exp), jnp.float32),
        "g3": 1.0 + 0.1 * jax.random.normal(ks[7], (exp,), jnp.float32),
        "b3": 0.1 * jax.random.normal(ks[8], (exp,), jnp.float32),
    }
    if with_proj:
        p["wsc"] = 0.1 * jax.random.normal(ks[9], (in_planes, exp), jnp.float32)
        p["gsc"] = 1.0 + 0.1 * jax.random.normal(ks[10], (exp,), jnp.float32)
        p["bsc"] = 0.1 * jax.random.normal(ks[11], (exp,), jnp.float32)
    return p


if __name__ == "__main__":
    key = jax.random.PRNGKey(0)
    k_pa, k_pb, k_xa, k_xb = jax.random.split(key, 4)

    N, H, W = 2, 16, 16
    configs = [
        # (name, in_planes, planes, path, stride, tm)
        # tm default is 512 (perf review); the 16x16 demo also runs tm=256 so
        # the streaming passes exercise a multi-step pipelined/parallel grid.
        ("projection", 8, 16, 4, 1, 256),   # projection shortcut (in_planes != 4*planes)
        ("identity", 64, 16, 4, 1, 512),    # identity shortcut   (in_planes == 4*planes)
    ]
    keys = [(k_pa, k_xa), (k_pb, k_xb)]

    for (name, in_planes, planes, path, stride, tm), (kp, kx) in zip(configs, keys):
        exp = 4 * planes
        with_proj = (stride != 1) or (in_planes != exp)
        params = _make_params(kp, in_planes, planes, path, with_proj)
        prep, meta = prepare_params(params, in_planes=in_planes, planes=planes, path=path)

        x_nchw = jax.random.normal(kx, (N, in_planes, H, W), jnp.float32)
        # bf16 activation stream: kernel and reference consume the same
        # bf16-representable input values.
        x_nhwc = jnp.transpose(x_nchw, (0, 2, 3, 1)).astype(jnp.bfloat16)

        out = jax.block_until_ready(
            bottleneck_block(x_nhwc, prep, meta, stride=stride, tm=tm))
        ref = jax.block_until_ready(
            reference(x_nhwc.astype(jnp.float32), params, stride=stride, path=path))

        expected_shape = (N, (H + 2 - 3) // stride + 1, (W + 2 - 3) // stride + 1, exp)
        assert out.shape == expected_shape, (name, out.shape)
        err = float(jnp.max(jnp.abs(out - ref)))
        # bf16 HBM storage of the x / z2 activation streams (perf review) adds a
        # small, bounded rounding deviation vs the f32-intermediate reference.
        if not err < 7e-2:
            raise AssertionError(f"{name}: mismatch vs reference, max abs err = {err}")

    print("KERNEL_OK")
</pallas_src>

<mosaic_0001>
module attributes {stable_mosaic.version = 11 : i64} {
  func.func @conv1_stats_kernel(%arg0: i32, %arg1: memref<256x8xbf16, #tpu.memory_space<vmem>>, %arg2: memref<8x16xbf16, #tpu.memory_space<vmem>>, %arg3: memref<1x2x16xf32, #tpu.memory_space<vmem>>) attributes {dimension_semantics = [#tpu.dimension_semantics<parallel>], iteration_bounds = array<i64: 2>, scalar_prefetch = 0 : i64, scratch_operands = 0 : i64, tpu.core_type = #tpu.core_type<tc>, window_params = [{transform_indices = @transform_0, window_bounds = array<i64: 256, 8>}, {pipeline_mode = #tpu.pipeline_mode<synchronous>, transform_indices = @transform_1, window_bounds = array<i64: 8, 16>}, {transform_indices = @transform_2, window_bounds = array<i64: 1, 2, 16>}]} {
    %c256_i32 = arith.constant 256 : i32
    %0 = arith.muli %arg0, %c256_i32 : i32
    %1 = tpu.iota {dimensions = array<i32: 0>} : vector<256x1xi32>
    %2 = vector.broadcast %0 : i32 to vector<256x1xi32>
    %3 = arith.addi %2, %1 : vector<256x1xi32>
    %c512_i32 = arith.constant 512 : i32
    %4 = vector.broadcast %c512_i32 : i32 to vector<256x1xi32>
    %5 = arith.cmpi slt, %3, %4 : vector<256x1xi32>
    %c0 = arith.constant 0 : index
    %c0_0 = arith.constant 0 : index
    %6 = vector.load %arg1[%c0, %c0_0] : memref<256x8xbf16, #tpu.memory_space<vmem>>, vector<256x8xbf16>
    %cst = arith.constant 0.000000e+00 : f32
    %7 = arith.truncf %cst : f32 to bf16
    %8 = vector.shape_cast %5 : vector<256x1xi1> to vector<256x1xi1>
    %9 = vector.broadcast %8 : vector<256x1xi1> to vector<256x8xi1>
    %10 = vector.broadcast %7 : bf16 to vector<256x8xbf16>
    %11 = arith.select %9, %6, %10 : vector<256x8xi1>, vector<256x8xbf16>
    %c0_1 = arith.constant 0 : index
    %c0_2 = arith.constant 0 : index
    %12 = vector.load %arg2[%c0_1, %c0_2] : memref<8x16xbf16, #tpu.memory_space<vmem>>, vector<8x16xbf16>
    %cst_3 = arith.constant dense<0.000000e+00> : vector<256x16xf32>
    %13 = tpu.matmul %11, %12, %cst_3 {dimension_numbers = #tpu.dot_dimension_numbers<[1], [0], [0], [1], [0, 0, 1, 1], [], []>} : vector<256x8xbf16>, vector<8x16xbf16>, vector<256x16xf32> -> vector<256x16xf32>
    %cst_4 = arith.constant dense<0.000000e+00> : vector<16xf32>
    %14 = vector.multi_reduction <add>, %13, %cst_4 [0] : vector<256x16xf32> to vector<16xf32>
    %15 = vector.shape_cast %14 : vector<16xf32> to vector<1x16xf32>
    %16 = arith.mulf %13, %13 : vector<256x16xf32>
    %cst_5 = arith.constant dense<0.000000e+00> : vector<16xf32>
    %17 = vector.multi_reduction <add>, %16, %cst_5 [0] : vector<256x16xf32> to vector<16xf32>
    %18 = vector.shape_cast %17 : vector<16xf32> to vector<1x16xf32>
    %19 = tpu.concatenate %15, %18 in 0 : vector<1x16xf32>, vector<1x16xf32> -> vector<2x16xf32>
    %20 = vector.shape_cast %19 : vector<2x16xf32> to vector<1x2x16xf32>
    %c0_6 = arith.constant 0 : index
    %c0_7 = arith.constant 0 : index
    %c0_8 = arith.constant 0 : index
    %21 = vector.load %arg3[%c0_6, %c0_7, %c0_8] : memref<1x2x16xf32, #tpu.memory_space<vmem>>, vector<1x2x16xf32>
    tpu.vector_store %arg3[%c0_6, %c0_7, %c0_8], %20 {strides = array<i32>} : memref<1x2x16xf32, #tpu.memory_space<vmem>>, vector<1x2x16xf32>,
    return
  }
  func.func @transform_0(%arg0: i32) -> (i32, i32) {
    %c0_i32 = arith.constant 0 : i32
    %c0_i32_0 = arith.constant 0 : i32
    return %arg0, %c0_i32 : i32, i32
  }
  func.func @transform_1(%arg0: i32) -> (i32, i32) {
    %c0_i32 = arith.constant 0 : i32
    %c0_i32_0 = arith.constant 0 : i32
    %c0_i32_1 = arith.constant 0 : i32
    return %c0_i32, %c0_i32_0 : i32, i32
  }
  func.func @transform_2(%arg0: i32) -> (i32, i32, i32) {
    %c0_i32 = arith.constant 0 : i32
    %c0_i32_0 = arith.constant 0 : i32
    %c0_i32_1 = arith.constant 0 : i32
    return %arg0, %c0_i32, %c0_i32_0 : i32, i32, i32
  }
}

</mosaic_0001>

<bundles_post_ra>
// kernel: tpu_custom_call.1
= control target key start
LH: loop header
LB: loop body
LE: loop exit
PB: predicated region body
PF: predicated region fallthrough
CT: control target
= control target key end

     0   :  { %7 = vsyncpa [#allocation3], 0  ;;  %s1490_s0 = inlined_call_operand.vmem [shape: bf16[512,8], index: 0, kind: input, shape index: {}]   ;;  %s1491_s1 = inlined_call_operand.vmem [shape: bf16[8,16], index: 1, kind: input, shape index: {}]   ;;  %s1492_s2 = inlined_call_operand.hbm [shape: f32[2,2,16], index: 2, kind: output, shape index: {}]  }
   0x1   :  { %9 = vsyncpa [#allocation3 + $0x1], 0  ;;  %s1026_s9 = smov 0   ;;  %s1028_s10 = smov 0  }
   0x2   :  { %s1030_s11 = smov 0   ;;  %s1032_s12 = smov 0  }
   0x3 LB: > { %s1047_s13 = sadd.s32 4294967295, %s1009_s12   ;;  %s877_s14 = sadd.s32 4294967294, %s1009_s12   ;;  %s1009_s12 = sphi %s1032_s12, %s1536_s12   ;;  %s1005_s11 = sphi %s1030_s11, %s1535_s11   ;;  %s1001_s10 = sphi %s1028_s10, %s1534_s10   ;;  %s997_s9 = sphi %s1026_s9, %s1533_s9  }
   0x4   : > { %s1051_s15 = sadd.s32 1, %s1009_s12   ;;  %s69_s16 = sadd.s32 1, %s1005_s11 }
   0x5   : > { %s66_s17 = ssub.s32 %s1009_s12, %s1051_s15  ;;  %p79_p0 = scmp.ne.s32.totalorder %s1005_s11, %s1001_s10 }
   0x6   : > { %p67_p1 = scmp.eq.s32.totalorder %s66_s17, 0  ;;  %p80_p2 = scmp.eq.s32.totalorder %s1047_s13, 1 }
   0x7   : > { %p85_p3 = scmp.ne.s32.totalorder %s1001_s10, %s997_s9  ;;  %p86_p4 = scmp.eq.s32.totalorder %s877_s14, 1 }
   0x8   : > { %s1062_s18 = scalar_select %p67_p1, %s1005_s11, %s69_s16  }
   0x9   : > { %p1064_p5 = por %p80_p2, %p79_p0  ;;  %p1068_p6 = por %p86_p4, %p85_p3 }
   0xa   : > { %p880_p7 = scmp.ge.s32.totalorder %s1009_s12, 1  ;;  %p116_p8 = scmp.lt.s32.totalorder %s1009_s12, 3 }
   0xc   : > { %p117_p9 = pnand %p880_p7, %p116_p8 }
   0xd   : > { %s882_s23 = sshll.u32 (!%p117_p9), %s1047_s13, 5  ;;  %s884_s24 = sshll.u32 (!%p117_p9), %s1047_s13, 8 }
   0xe   : > { %120 = sbr.rel (%p117_p9) target bundleno = 285 (0x11d), region = 28  ;;  %p139_p10 = scmp.lt.s32.totalorder (!%p117_p9), %s882_s23, 63 }
   0xf   : > { %s135_s29 = sand.u32 (!%p117_p9), 1, %s1001_s10   ;;  %s902_s3 = sshll.u32 (!%p117_p9), %s1047_s13, 1 }
  0x10   : > { %s881_s30 = sshll.u32 (!%p117_p9), %s135_s29, 1  ;;  %s813_s6 = scalar_lea.hbm (!%p117_p9), %s1492_s2, %s902_s3 }
  0x11   : > { %s137_s7 = scalar_lea.vmem (!%p117_p9), [#allocation2], %s881_s30  ;;  %s817_s14 = sshll.u32 (!%p117_p9), %s813_s6, 4  ;;  %s818_s14 = int_to_ptr.hbm [resolvable:$true] %s817_s14 }
  0x12   : > { %s815_s8 = sshll.u32 (!%p117_p9), %s137_s7, 4  ;;  %s803_s13 = scalar_lea.sflag (!%p117_p9), [#allocation3], %s135_s29  ;;  %s816_s8 = int_to_ptr.vmem [resolvable:$true] %s815_s8 }
  0x13   : > { %v404_v0 = vld [vmem:[%s1491_s1] sm:$0xf]  ;;  %vm534_vm0 = vcmask 1043456   ;;  %v146_v1 = vlaneseq  ;;  %v1079_v3 = vstv %s884_s24  ;;  %s1538_s23 = smov (!%p139_p10, %s882_s23), 63  ;;  %vm485_vm8 = vcmask 64512   ;;  %s961_s16 = sshra.s32 %s818_s14, 4  ;;  %s962_s16 = int_to_ptr.hbm [resolvable:$true] %s961_s16 }
  0x14   : > { %v536_v2 = vsel %vm534_vm0, %v404_v0, 0  ;;  %s883_s25 = sshll.u32 %s1538_s23, 2  ;;  %s963_s17 = scalar_lea.hbm %s962_s16, 2 }
  0x15   : > { %545 = vmatpush.bf16.msra.mxu0 %v536_v2  ;;  %v1081_v4 = vshrl.u32 %v146_v1, 7  ;;  %905 = vmatpush.bf16.msra.mxu1 %v536_v2  ;;  %s1095_s28 = scalar_lea.vmem %s1490_s0, %s883_s25  ;;  %p964_p11 = scmp.ne.s32.totalorder %s962_s16, %s963_s17 }
  0x16   : > { %906 = vmatpush.bf16.msra.mxu2 %v536_v2  ;;  %907 = vmatpush.bf16.msra.mxu3 %v536_v2  ;;  %v244_v16 = vld [vmem:[%s1095_s28] sm:$0xf]  ;;  %v245_v17 = vld [vmem:[%s1095_s28 + $0x4] sm:$0xf]  ;;  %v246_v42 = vld [vmem:[%s1095_s28 + $0x8] sm:$0xf]  ;;  %p968_p0 = scmp.lt.s32.totalorder %s962_s16, %s1492_s2 }
  0x17   : > { %v148_v5 = vadd.s32 8, %v1081_v4  ;;  %v180_v6 = vadd.s32 %v1079_v3, %v1081_v4  ;;  %v155_v7 = vadd.s32 64, %v1081_v4  ;;  %v156_v8 = vadd.s32 72, %v1081_v4  ;;  %v252_v23 = vld [vmem:[%s1095_s28 + $0x20] sm:$0xf]  ;;  %p965_p12 = pnand %p964_p11, %p1064_p5  ;;  %s967_s23 = scalar_lea.hbm %s1492_s2, 4 }
  0x18   : > { %v149_v9 = vadd.s32 16, %v1081_v4  ;;  %v150_v10 = vadd.s32 24, %v1081_v4  ;;  %v163_v11 = vadd.s32 128, %v1081_v4  ;;  %v164_v12 = vadd.s32 136, %v1081_v4  ;;  %v253_v25 = vld [vmem:[%s1095_s28 + $0x24] sm:$0xf]  ;;  %p969_p1 = scmp.lt.s32.totalorder %s967_s23, %s963_s17 }
  0x19   : > { %v181_v13 = vadd.s32 %v1079_v3, %v148_v5  ;;  %vm212_vm1 = vcmp.lt.s32.totalorder %v180_v6, 512  ;;  %v188_v14 = vadd.s32 %v1079_v3, %v155_v7  ;;  %v189_v15 = vadd.s32 %v1079_v3, %v156_v8  ;;  %v260_v34 = vld [vmem:[%s1095_s28 + $0x40] sm:$0xf]  ;;  %v261_v39 = vld [vmem:[%s1095_s28 + $0x44] sm:$0xf]  ;;  %p966_p13 = pneg %p965_p12 }
  0x1a   : > { %vm340_vm2 = vmpackc.low %vm212_vm1, %vm212_vm1  ;;  %v182_v18 = vadd.s32 %v1079_v3, %v149_v9  ;;  %v183_v19 = vadd.s32 %v1079_v3, %v150_v10  ;;  %v196_v20 = vadd.s32 %v1079_v3, %v163_v11  ;;  %v197_v21 = vadd.s32 %v1079_v3, %v164_v12  ;;  %v247_v43 = vld [vmem:[%s1095_s28 + $0xc] sm:$0xf]  ;;  %v254_v48 = vld [vmem:[%s1095_s28 + $0x28] sm:$0xf]  ;;  %p970_p2 = por %p969_p1, %p968_p0 }
  0x1b   : > { %vm213_vm3 = vcmp.lt.s32.totalorder %v181_v13, 512  ;;  %v372_v22 = vsel %vm340_vm2, %v244_v16, 0  ;;  %vm220_vm4 = vcmp.lt.s32.totalorder %v188_v14, 512  ;;  %vm221_vm5 = vcmp.lt.s32.totalorder %v189_v15, 512  ;;  %v255_v53 = vld [vmem:[%s1095_s28 + $0x2c] sm:$0xf] }
  0x1c   : > { %vm341_vm6 = vmpackc.low %vm213_vm3, %vm213_vm3  ;;  %v437_v24 = vunpack.c.l.b16 %v372_v22  ;;  %vm214_vm7 = vcmp.lt.s32.totalorder %v182_v18, 512  ;;  %vm215_vm10 = vcmp.lt.s32.totalorder %v183_v19, 512  ;;  %v157_v27 = vadd.s32 80, %v1081_v4  ;;  %v262_v7 = vld [vmem:[%s1095_s28 + $0x48] sm:$0xf]  ;;  %p971_p3 = pnand %p970_p2, %p966_p13 }
  0x1d   : > { %v373_v26 = vsel %vm341_vm6, %v245_v17, 0  ;;  %vm348_vm9 = vmpackc.low %vm220_vm4, %vm220_vm4  ;;  %vm228_vm12 = vcmp.lt.s32.totalorder %v196_v20, 512  ;;  %v158_v30 = vadd.s32 88, %v1081_v4  ;;  %vm229_vm14 = vcmp.lt.s32.totalorder %v197_v21, 512  ;;  %v263_v12 = vld [vmem:[%s1095_s28 + $0x4c] sm:$0xf] }
  0x1e   : > { %v438_v28 = vunpack.c.l.b16 %v373_v26  ;;  %vm349_vm11 = vmpackc.low %vm221_vm5, %vm221_vm5  ;;  %v380_v29 = vsel %vm348_vm9, %v252_v23, 0  ;;  %v190_v35 = vadd.s32 %v1079_v3, %v157_v27  ;;  %v165_v50 = vadd.s32 144, %v1081_v4  ;;  %v268_v14 = vld [vmem:[%s1095_s28 + $0x60] sm:$0xf]  ;;  %v269_v18 = vld [vmem:[%s1095_s28 + $0x64] sm:$0xf] }
  0x1f   : > { %v381_v31 = vsel %vm349_vm11, %v253_v25, 0  ;;  %v445_v32 = vunpack.c.l.b16 %v380_v29  ;;  %vm1110_vm13 = vmpackc.low %vm214_vm7, %vm214_vm7  ;;  %v191_v40 = vadd.s32 %v1079_v3, %v158_v30  ;;  %v151_v55 = vadd.s32 32, %v1081_v4  ;;  %v248_v30 = vld [vmem:[%s1095_s28 + $0x10] sm:$0xf]  ;;  %v270_v54 = vld [vmem:[%s1095_s28 + $0x68] sm:$0xf] }
  0x20   : > { %v469_v36 = vpack.c.b16 %v438_v28, %v437_v24  ;;  %v446_v37 = vunpack.c.l.b16 %v381_v31  ;;  %vm1116_vm15 = vmpackc.low %vm215_vm10, %vm215_vm10  ;;  %vm222_vm1 = vcmp.lt.s32.totalorder %v190_v35, 512  ;;  %v374_v51 = vsel %vm1110_vm13, %v246_v42, 0  ;;  %v256_v38 = vld [vmem:[%s1095_s28 + $0x30] sm:$0xf] }
  0x21   : > { %vm356_vm0 = vmpackc.low %vm228_vm12, %vm228_vm12  ;;  %vm223_vm3 = vcmp.lt.s32.totalorder %v191_v40, 512  ;;  %v375_v52 = vsel %vm1116_vm15, %v247_v43, 0  ;;  %v152_v57 = vadd.s32 40, %v1081_v4  ;;  %v166_v58 = vadd.s32 152, %v1081_v4 }
  0x22   : > { %885 = vmatmul.msk.bf16.vlgmr.msra.gmra.mxu0 %vm485_vm8, %v469_v36  ;;  %v473_v41 = vpack.c.b16 %v446_v37, %v445_v32  ;;  %vm357_vm2 = vmpackc.low %vm229_vm14, %vm229_vm14  ;;  %v388_v44 = vsel %vm356_vm0, %v260_v34, 0  ;;  %v198_v59 = vadd.s32 %v1079_v3, %v165_v50  ;;  %v171_v61 = vadd.s32 192, %v1081_v4  ;;  %v249_v37 = vld [vmem:[%s1095_s28 + $0x14] sm:$0xf] }
  0x23   : > { %v389_v45 = vsel %vm357_vm2, %v261_v39, 0  ;;  %v453_v46 = vunpack.c.l.b16 %v388_v44  ;;  %vm1127_vm4 = vmpackc.low %vm222_vm1, %vm222_vm1  ;;  %v172_v62 = vadd.s32 200, %v1081_v4  ;;  %v159_v63 = vadd.s32 96, %v1081_v4  ;;  %v257_v44 = vld [vmem:[%s1095_s28 + $0x34] sm:$0xf] }
  0x24   : > { %889 = vmatmul.msk.bf16.vlgmr.msra.gmra.mxu1 %vm485_vm8, %v473_v41  ;;  %v454_v47 = vunpack.c.l.b16 %v389_v45  ;;  %vm1137_vm5 = vmpackc.low %vm223_vm3, %vm223_vm3  ;;  %v382_v60 = vsel %vm1127_vm4, %v254_v48, 0  ;;  %v439_v0 = vunpack.c.l.b16 %v374_v51  ;;  %v440_v1 = vunpack.c.l.b16 %v375_v52  ;;  %v250_v39 = vld [vmem:[%s1095_s28 + $0x18] sm:$0xf]  ;;  %v273_v45 = vld [vmem:[%s1095_s28 + $0x74] sm:$0xf] }
  0x25   : > { %v383_v2 = vsel %vm1137_vm5, %v255_v53, 0  ;;  %v199_v5 = vadd.s32 %v1079_v3, %v166_v58  ;;  %v184_v6 = vadd.s32 %v1079_v3, %v151_v55  ;;  %vm230_vm6 = vcmp.lt.s32.totalorder %v198_v59, 512  ;;  %v266_v59 = vld [vmem:[%s1095_s28 + $0x58] sm:$0xf] }
  0x26   : > { %v477_v56 = vpack.c.b16 %v454_v47, %v453_v46  ;;  %v204_v8 = vadd.s32 %v1079_v3, %v171_v61  ;;  %v205_v9 = vadd.s32 %v1079_v3, %v172_v62  ;;  %v447_v10 = vunpack.c.l.b16 %v382_v60  ;;  %vm1160_vm9 = vmpackc.low %vm230_vm6, %vm230_vm6 }
  0x27   : > { %v185_v11 = vadd.s32 %v1079_v3, %v152_v57  ;;  %vm231_vm7 = vcmp.lt.s32.totalorder %v199_v5, 512  ;;  %v160_v15 = vadd.s32 104, %v1081_v4  ;;  %v448_v16 = vunpack.c.l.b16 %v383_v2 }
  0x28   : > { %893 = vmatmul.msk.bf16.vlgmr.msra.gmra.mxu2 %vm485_vm8, %v477_v56  ;;  %vm1166_vm10 = vmpackc.low %vm231_vm7, %vm231_vm7  ;;  %vm236_vm11 = vcmp.lt.s32.totalorder %v204_v8, 512  ;;  %vm237_vm12 = vcmp.lt.s32.totalorder %v205_v9, 512  ;;  %v192_v19 = vadd.s32 %v1079_v3, %v159_v63  ;;  %v470_v20 = vpack.c.b16 %v440_v1, %v439_v0  ;;  %v271_v56 = vld [vmem:[%s1095_s28 + $0x6c] sm:$0xf]  ;;  %v265_v8 = vld [vmem:[%s1095_s28 + $0x54] sm:$0xf] }
  0x29   : > { %vm364_vm13 = vmpackc.low %vm236_vm11, %vm236_vm11  ;;  %v193_v21 = vadd.s32 %v1079_v3, %v160_v15  ;;  %vm216_vm14 = vcmp.lt.s32.totalorder %v184_v6, 512  ;;  %v390_v22 = vsel %vm1160_vm9, %v262_v7, 0  ;;  %v391_v23 = vsel %vm1166_vm10, %v263_v12, 0  ;;  %v264_v7 = vld [vmem:[%s1095_s28 + $0x50] sm:$0xf] }
  0x2a   : > { %vm365_vm15 = vmpackc.low %vm237_vm12, %vm237_vm12  ;;  %v396_v24 = vsel %vm364_vm13, %v268_v14, 0  ;;  %vm217_vm0 = vcmp.lt.s32.totalorder %v185_v11, 512  ;;  %v167_v27 = vadd.s32 160, %v1081_v4  ;;  %v474_v28 = vpack.c.b16 %v448_v16, %v447_v10 }
  0x2b   : > { %v397_v25 = vsel %vm365_vm15, %v269_v18, 0  ;;  %v461_v26 = vunpack.c.l.b16 %v396_v24  ;;  %vm224_vm1 = vcmp.lt.s32.totalorder %v192_v19, 512  ;;  %vm1179_vm2 = vmpackc.low %vm216_vm14, %vm216_vm14  ;;  %v455_v32 = vunpack.c.l.b16 %v390_v22 }
  0x2c   : > { %v462_v29 = vunpack.c.l.b16 %v397_v25  ;;  %v456_v33 = vunpack.c.l.b16 %v391_v23  ;;  %vm225_vm3 = vcmp.lt.s32.totalorder %v193_v21, 512  ;;  %v168_v34 = vadd.s32 168, %v1081_v4  ;;  %vm1184_vm4 = vmpackc.low %vm217_vm0, %vm217_vm0 }
  0x2d   : > { %vm1191_vm5 = vmpackc.low %vm224_vm1, %vm224_vm1  ;;  %v200_v40 = vadd.s32 %v1079_v3, %v167_v27  ;;  %v173_v41 = vadd.s32 208, %v1081_v4  ;;  %v174_v42 = vadd.s32 216, %v1081_v4  ;;  %v376_v43 = vsel %vm1179_vm2, %v248_v30, 0 }
  0x2e   : > { %v481_v36 = vpack.c.b16 %v462_v29, %v461_v26  ;;  %vm1202_vm6 = vmpackc.low %vm225_vm3, %vm225_vm3  ;;  %v153_v46 = vadd.s32 48, %v1081_v4  ;;  %v201_v47 = vadd.s32 %v1079_v3, %v168_v34  ;;  %v478_v48 = vpack.c.b16 %v456_v33, %v455_v32  ;;  %v274_v29 = vld [vmem:[%s1095_s28 + $0x78] sm:$0xf]  ;;  %v275_v34 = vld [vmem:[%s1095_s28 + $0x7c] sm:$0xf] }
  0x2f   : > { %v154_v49 = vadd.s32 56, %v1081_v4  ;;  %v206_v50 = vadd.s32 %v1079_v3, %v173_v41  ;;  %v207_v51 = vadd.s32 %v1079_v3, %v174_v42  ;;  %v377_v52 = vsel %vm1184_vm4, %v249_v37, 0 }
  0x30   : > { %897 = vmatmul.msk.bf16.vlgmr.msra.gmra.mxu3 %vm485_vm8, %v481_v36  ;;  %v384_v53 = vsel %vm1191_vm5, %v256_v38, 0  ;;  %v385_v55 = vsel %vm1202_vm6, %v257_v44, 0  ;;  %vm232_vm7 = vcmp.lt.s32.totalorder %v200_v40, 512  ;;  %v161_v57 = vadd.s32 112, %v1081_v4  ;;  %v251_v40 = vld [vmem:[%s1095_s28 + $0x1c] sm:$0xf] }
  0x31   : > { %vm238_vm9 = vcmp.lt.s32.totalorder %v206_v50, 512  ;;  %v441_v58 = vunpack.c.l.b16 %v376_v43  ;;  %vm233_vm10 = vcmp.lt.s32.totalorder %v201_v47, 512  ;;  %vm239_vm11 = vcmp.lt.s32.totalorder %v207_v51, 512  ;;  %vm1232_vm14 = vmpackc.low %vm232_vm7, %vm232_vm7  ;;  %v272_v44 = vld [vmem:[%s1095_s28 + $0x70] sm:$0xf] }
  0x32   : > { %886 = vmatmul.msk.bf16.gmra.mxu0 %vm485_vm8, %v470_v20  ;;  %vm1221_vm12 = vmpackc.low %vm238_vm9, %vm238_vm9  ;;  %v442_v60 = vunpack.c.l.b16 %v377_v52  ;;  %v186_v61 = vadd.s32 %v1079_v3, %v153_v46  ;;  %v187_v62 = vadd.s32 %v1079_v3, %v154_v49  ;;  %v449_v0 = vunpack.c.l.b16 %v384_v53  ;;  %v258_v47 = vld [vmem:[%s1095_s28 + $0x38] sm:$0xf] }
  0x33   : > { %vm367_vm13 = vmpackc.low %vm239_vm11, %vm239_vm11  ;;  %v398_v63 = vsel %vm1221_vm12, %v270_v54, 0  ;;  %v450_v1 = vunpack.c.l.b16 %v385_v55  ;;  %v175_v6 = vadd.s32 224, %v1081_v4  ;;  %v162_v10 = vadd.s32 120, %v1081_v4 }
  0x34   : > { %890 = vmatmul.msk.bf16.gmra.mxu1 %vm485_vm8, %v474_v28  ;;  %v399_v5 = vsel %vm367_vm13, %v271_v56, 0  ;;  %vm1241_vm15 = vmpackc.low %vm233_vm10, %vm233_vm10  ;;  %v194_v11 = vadd.s32 %v1079_v3, %v161_v57  ;;  %v463_v12 = vunpack.c.l.b16 %v398_v63  ;;  %v176_v14 = vadd.s32 232, %v1081_v4 }
  0x35   : > { %v464_v13 = vunpack.c.l.b16 %v399_v5  ;;  %v177_v15 = vadd.s32 240, %v1081_v4  ;;  %v471_v16 = vpack.c.b16 %v442_v60, %v441_v58  ;;  %vm218_vm0 = vcmp.lt.s32.totalorder %v186_v61, 512  ;;  %v267_v60 = vld [vmem:[%s1095_s28 + $0x5c] sm:$0xf] }
  0x36   : > { %vm219_vm1 = vcmp.lt.s32.totalorder %v187_v62, 512  ;;  %v475_v17 = vpack.c.b16 %v450_v1, %v449_v0  ;;  %v392_v18 = vsel %vm1232_vm14, %v264_v7, 0  ;;  %v393_v19 = vsel %vm1241_vm15, %v265_v8, 0  ;;  %vm1258_vm2 = vmpackc.low %vm218_vm0, %vm218_vm0 }
  0x37   : > { %v208_v20 = vadd.s32 %v1079_v3, %v175_v6  ;;  %v169_v21 = vadd.s32 176, %v1081_v4  ;;  %v209_v22 = vadd.s32 %v1079_v3, %v176_v14  ;;  %v178_v23 = vadd.s32 248, %v1081_v4  ;;  %vm1265_vm4 = vmpackc.low %vm219_vm1, %vm219_vm1 }
  0x38   : > { %894 = vmatmul.msk.bf16.gmra.mxu2 %vm485_vm8, %v478_v48  ;;  %v210_v24 = vadd.s32 %v1079_v3, %v177_v15  ;;  %v482_v26 = vpack.c.b16 %v464_v13, %v463_v12  ;;  %v195_v27 = vadd.s32 %v1079_v3, %v162_v10  ;;  %vm226_vm3 = vcmp.lt.s32.totalorder %v194_v11, 512  ;;  %v259_v48 = vld [vmem:[%s1095_s28 + $0x3c] sm:$0xf] }
  0x39   : > { %v170_v28 = vadd.s32 184, %v1081_v4  ;;  %v457_v31 = vunpack.c.l.b16 %v392_v18  ;;  %v458_v32 = vunpack.c.l.b16 %v393_v19  ;;  %v211_v33 = vadd.s32 %v1079_v3, %v178_v23  ;;  %vm1272_vm9 = vmpackc.low %vm226_vm3, %vm226_vm3 }
  0x3a   : > { %vm242_vm5 = vcmp.lt.s32.totalorder %v210_v24, 512  ;;  %vm240_vm6 = vcmp.lt.s32.totalorder %v208_v20, 512  ;;  %v202_v4 = vadd.s32 %v1079_v3, %v169_v21  ;;  %vm241_vm10 = vcmp.lt.s32.totalorder %v209_v22, 512 }
  0x3b   : > { %vm370_vm7 = vmpackc.low %vm242_vm5, %vm242_vm5  ;;  %vm243_vm11 = vcmp.lt.s32.totalorder %v211_v33, 512  ;;  %vm227_vm12 = vcmp.lt.s32.totalorder %v195_v27, 512  ;;  %v203_v37 = vadd.s32 %v1079_v3, %v170_v28  ;;  %v479_v41 = vpack.c.b16 %v458_v32, %v457_v31 }
  0x3c   : > { %v402_v36 = vsel %vm370_vm7, %v274_v29, 0  ;;  %vm371_vm13 = vmpackc.low %vm243_vm11, %vm243_vm11  ;;  %vm234_vm1 = vcmp.lt.s32.totalorder %v202_v4, 512  ;;  %v378_v50 = vsel %vm1258_vm2, %v250_v39, 0  ;;  %v379_v51 = vsel %vm1265_vm4, %v251_v40, 0 }
  0x3d   : > { %v467_v38 = vunpack.c.l.b16 %v402_v36  ;;  %vm1284_vm14 = vmpackc.low %vm240_vm6, %vm240_vm6  ;;  %v403_v43 = vsel %vm371_vm13, %v275_v34, 0  ;;  %vm235_vm3 = vcmp.lt.s32.totalorder %v203_v37, 512  ;;  %v386_v55 = vsel %vm1272_vm9, %v258_v47, 0 }
  0x3e   : > { %vm1292_vm15 = vmpackc.low %vm241_vm10, %vm241_vm10  ;;  %v468_v46 = vunpack.c.l.b16 %v403_v43  ;;  %v400_v53 = vsel %vm1284_vm14, %v272_v44, 0  ;;  %v443_v57 = vunpack.c.l.b16 %v378_v50  ;;  %v444_v58 = vunpack.c.l.b16 %v379_v51 }
  0x3f   : > { %vm1300_vm0 = vmpackc.low %vm227_vm12, %vm227_vm12  ;;  %v401_v54 = vsel %vm1292_vm15, %v273_v45, 0  ;;  %v465_v61 = vunpack.c.l.b16 %v400_v53  ;;  %v451_v63 = vunpack.c.l.b16 %v386_v55  ;;  %vm798_vm5 = vcmask 1040384  }
  0x40   : > { %898 = vmatmul.msk.bf16.gmra.mxu3 %vm485_vm8, %v482_v26  ;;  %v484_v52 = vpack.c.b16 %v468_v46, %v467_v38  ;;  %v387_v56 = vsel %vm1300_vm0, %v259_v48, 0  ;;  %vm362_vm2 = vmpackc.low %vm234_vm1, %vm234_vm1  ;;  %v466_v62 = vunpack.c.l.b16 %v401_v54  ;;  %v472_v5 = vpack.c.b16 %v444_v58, %v443_v57 }
  0x41   : > { %vm363_vm4 = vmpackc.low %vm235_vm3, %vm235_vm3  ;;  %v452_v0 = vunpack.c.l.b16 %v387_v56  ;;  %v394_v1 = vsel %vm362_vm2, %v266_v59, 0  ;;  %vm800_vm6 = vcmask 123904  }
  0x42   : > { %887 = vmatmul.msk.bf16.gmra.mxu0 %vm485_vm8, %v471_v16  ;;  %v395_v2 = vsel %vm363_vm4, %v267_v60, 0  ;;  %v483_v6 = vpack.c.b16 %v466_v62, %v465_v61  ;;  %v459_v8 = vunpack.c.l.b16 %v394_v1 }
  0x43   : > { %v476_v7 = vpack.c.b16 %v452_v0, %v451_v63  ;;  %v460_v9 = vunpack.c.l.b16 %v395_v2 }
  0x44   : > { %891 = vmatmul.msk.bf16.gmra.mxu1 %vm485_vm8, %v475_v17 }
  0x45   : > { %v480_v10 = vpack.c.b16 %v460_v9, %v459_v8 }
  0x48   : > { %895 = vmatmul.msk.bf16.gmra.mxu2 %vm485_vm8, %v479_v41 }
  0x50   : > { %899 = vmatmul.msk.bf16.gmra.mxu3 %vm485_vm8, %v483_v6 }
  0x52   : > { %888 = vmatmul.msk.bf16.gmra.mxu0 %vm485_vm8, %v472_v5 }
  0x54   : > { %892 = vmatmul.msk.bf16.gmra.mxu1 %vm485_vm8, %v476_v7 }
  0x58   : > { %896 = vmatmul.msk.bf16.gmra.mxu2 %vm485_vm8, %v480_v10 }
  0x60   : > { %900 = vmatmul.msk.bf16.gmra.mxu3 %vm485_vm8, %v484_v52  ;;  %vm627_vm8 = vcmask 130048  }
  0x9f   : > { %v547_v11 = vpop.f32.mrf.mxu0 }
  0xa0   : > { %v697_v28 = vmul.f32 %v547_v11, %v547_v11  ;;  %v628_v32 = vsel %vm627_vm8, %v547_v11, 0.0 }
  0xa1   : > { %v567_v12 = vpop.f32.mrf.mxu1 }
  0xa2   : > { %v729_v36 = vsel %vm627_vm8, %v697_v28, 0.0  ;;  %v705_v63 = vmul.f32 %v567_v12, %v567_v12  ;;  %v643_v7 = vsel %vm627_vm8, %v567_v12, 0.0 }
  0xa7   : > { %v549_v13 = vpop.f32.mrf.mxu0 }
  0xa8   : > { %v698_v27 = vmul.f32 %v549_v13, %v549_v13  ;;  %v629_v29 = vsel %vm627_vm8, %v549_v13, 0.0 }
  0xa9   : > { %v1324_v14 = vpop.f32.mrf.mxu1  ;;  %v630_v4 = vadd.f32 %v629_v29, %v628_v32 }
  0xaa   : > { %v730_v33 = vsel %vm627_vm8, %v698_v27, 0.0  ;;  %v706_v8 = vmul.f32 %v1324_v14, %v1324_v14 }
  0xab   : > { %v1326_v15 = vpop.f32.mrf.mxu2  ;;  %v731_v40 = vadd.f32 %v730_v33, %v729_v36 }
  0xac   : > { %v746_v12 = vsel %vm627_vm8, %v706_v8, 0.0 }
  0xaf   : > { %v552_v16 = vpop.f32.mrf.mxu0 }
  0xb0   : > { %v699_v30 = vmul.f32 %v552_v16, %v552_v16  ;;  %v631_v34 = vsel %vm627_vm8, %v552_v16, 0.0  ;;  %v744_v16 = vsel %vm627_vm8, %v705_v63, 0.0 }
  0xb1   : > { %v1328_v17 = vpop.f32.mrf.mxu1  ;;  %v632_v41 = vadd.f32 %v631_v34, %v630_v4 }
  0xb2   : > { %v732_v37 = vsel %vm627_vm8, %v699_v30, 0.0  ;;  %v647_v28 = vsel %vm627_vm8, %v1328_v17, 0.0 }
  0xb3   : > { %v1330_v19 = vpop.f32.mrf.mxu2  ;;  %v1334_v21 = vpop.f32.mrf.mxu3  ;;  %v733_v46 = vadd.f32 %v732_v37, %v731_v40 }
  0xb7   : > { %v554_v18 = vpop.f32.mrf.mxu0 }
  0xb8   : > { %v700_v35 = vmul.f32 %v554_v18, %v554_v18  ;;  %v633_v38 = vsel %vm627_vm8, %v554_v18, 0.0  ;;  %v645_v18 = vsel %vm627_vm8, %v1324_v14, 0.0 }
  0xb9   : > { %v1332_v20 = vpop.f32.mrf.mxu1  ;;  %v634_v47 = vadd.f32 %v633_v38, %v632_v41 }
  0xba   : > { %v734_v44 = vsel %vm627_vm8, %v700_v35, 0.0  ;;  %v708_v29 = vmul.f32 %v1332_v20, %v1332_v20  ;;  %v649_v14 = vsel %vm627_vm8, %v1332_v20, 0.0 }
  0xbb   : > { %v1336_v23 = vpop.f32.mrf.mxu2  ;;  %v1340_v26 = vpop.f32.mrf.mxu3  ;;  %v735_v52 = vadd.f32 %v734_v44, %v733_v46 }
  0xbc   : > { %v750_v37 = vsel %vm627_vm8, %v708_v29, 0.0 }
  0xbf   : > { %v557_v22 = vpop.f32.mrf.mxu0 }
  0xc0   : > { %v701_v39 = vmul.f32 %v557_v22, %v557_v22  ;;  %v635_v45 = vsel %vm627_vm8, %v557_v22, 0.0  ;;  %v707_v22 = vmul.f32 %v1328_v17, %v1328_v17 }
  0xc1   : > { %v1338_v24 = vpop.f32.mrf.mxu1  ;;  %v636_v53 = vadd.f32 %v635_v45, %v634_v47 }
  0xc2   : > { %v736_v49 = vsel %vm627_vm8, %v701_v39, 0.0  ;;  %v748_v34 = vsel %vm627_vm8, %v707_v22, 0.0  ;;  %v709_v35 = vmul.f32 %v1338_v24, %v1338_v24  ;;  %v651_v17 = vsel %vm627_vm8, %v1338_v24, 0.0 }
  0xc3   : > { %v1343_v31 = vpop.f32.mrf.mxu2  ;;  %v1353_v48 = vpop.f32.mrf.mxu3  ;;  %v737_v56 = vadd.f32 %v736_v49, %v735_v52  ;;  %v713_v52 = vmul.f32 %v1326_v15, %v1326_v15 }
  0xc5   : > { %v760_v63 = vsel %vm627_vm8, %v713_v52, 0.0 }
  0xc7   : > { %v559_v25 = vpop.f32.mrf.mxu0 }
  0xc8   : > { %v702_v3 = vmul.f32 %v559_v25, %v559_v25  ;;  %v637_v50 = vsel %vm627_vm8, %v559_v25, 0.0 }
  0xc9   : > { %v579_v43 = vpop.f32.mrf.mxu1  ;;  %v638_v57 = vadd.f32 %v637_v50, %v636_v53 }
  0xca   : > { %v738_v54 = vsel %vm627_vm8, %v702_v3, 0.0  ;;  %v710_v38 = vmul.f32 %v579_v43, %v579_v43  ;;  %v653_v44 = vsel %vm627_vm8, %v579_v43, 0.0 }
  0xcb   : > { %v1359_v58 = vpop.f32.mrf.mxu2  ;;  %v739_v60 = vadd.f32 %v738_v54, %v737_v56  ;;  %v1367_v13 = vpop.f32.mrf.mxu3 }
  0xcc   : > { %v754_v47 = vsel %vm627_vm8, %v710_v38, 0.0 }
  0xcf   : > { %v562_v42 = vpop.f32.mrf.mxu0 }
  0xd0   : > { %v703_v51 = vmul.f32 %v562_v42, %v562_v42  ;;  %v639_v55 = vsel %vm627_vm8, %v562_v42, 0.0  ;;  %v752_v42 = vsel %vm627_vm8, %v709_v35, 0.0 }
  0xd1   : > { %v640_v61 = vadd.f32 %v639_v55, %v638_v57  ;;  %v582_v6 = vpop.f32.mrf.mxu1  ;;  %v659_v57 = vsel %vm627_vm8, %v1326_v15, 0.0  ;;  %v663_v15 = vsel %vm627_vm8, %v1336_v23, 0.0 }
  0xd2   : > { %v740_v59 = vsel %vm627_vm8, %v703_v51, 0.0  ;;  %v711_v45 = vmul.f32 %v582_v6, %v582_v6  ;;  %v655_v49 = vsel %vm627_vm8, %v582_v6, 0.0 }
  0xd3   : > { %v741_v2 = vadd.f32 %v740_v59, %v739_v60  ;;  %v599_v33 = vpop.f32.mrf.mxu2  ;;  %v1389_v46 = vpop.f32.mrf.mxu3  ;;  %v714_v59 = vmul.f32 %v1330_v19, %v1330_v19 }
  0xd4   : > { %v756_v53 = vsel %vm627_vm8, %v711_v45, 0.0 }
  0xd5   : > { %v762_v6 = vsel %vm627_vm8, %v714_v59, 0.0 }
  0xd7   : > { %v564_v62 = vpop.f32.mrf.mxu0 }
  0xd8   : > { %v641_v0 = vsel %vm627_vm8, %v564_v62, 0.0  ;;  %v704_v1 = vmul.f32 %v564_v62, %v564_v62 }
  0xd9   : > { %v642_v5 = vadd.f32 %v641_v0, %v640_v61  ;;  %v584_v41 = vpop.f32.mrf.mxu1  ;;  %v661_v0 = vsel %vm627_vm8, %v1330_v19, 0.0  ;;  %v665_v19 = vsel %vm627_vm8, %v1343_v31, 0.0 }
  0xda   : > { %v742_v9 = vsel %vm627_vm8, %v704_v1, 0.0  ;;  %v712_v50 = vmul.f32 %v584_v41, %v584_v41  ;;  %v657_v54 = vsel %vm627_vm8, %v584_v41, 0.0  ;;  %v715_v1 = vmul.f32 %v1336_v23, %v1336_v23 }
  0xdb   : > { %v644_v10 = vadd.f32 %v643_v7, %v642_v5  ;;  %v743_v11 = vadd.f32 %v742_v9, %v741_v2  ;;  %v602_v56 = vpop.f32.mrf.mxu2  ;;  %v716_v7 = vmul.f32 %v1343_v31, %v1343_v31  ;;  %v667_v23 = vsel %vm627_vm8, %v1359_v58, 0.0 }
  0xdc   : > { %v758_v60 = vsel %vm627_vm8, %v712_v50, 0.0  ;;  %v723_v50 = vmul.f32 %v1353_v48, %v1353_v48 }
  0xdd   : > { %v646_v25 = vadd.f32 %v645_v18, %v644_v10  ;;  %v745_v27 = vadd.f32 %v744_v16, %v743_v11  ;;  %v619_v10 = vpop.f32.mrf.mxu3  ;;  %v764_v11 = vsel %vm627_vm8, %v715_v1, 0.0  ;;  %v717_v16 = vmul.f32 %v1359_v58, %v1359_v58 }
  0xde   : > { %v721_v58 = vmul.f32 %v1334_v21, %v1334_v21 }
  0xdf   : > { %v648_v30 = vadd.f32 %v647_v28, %v646_v25  ;;  %v747_v32 = vadd.f32 %v746_v12, %v745_v27  ;;  %v766_v25 = vsel %vm627_vm8, %v716_v7, 0.0  ;;  %v718_v27 = vmul.f32 %v599_v33, %v599_v33 }
  0xe1   : > { %v749_v4 = vadd.f32 %v748_v34, %v747_v32  ;;  %v650_v36 = vadd.f32 %v649_v14, %v648_v30  ;;  %v768_v30 = vsel %vm627_vm8, %v717_v16, 0.0  ;;  %v669_v32 = vsel %vm627_vm8, %v599_v33, 0.0 }
  0xe2   : > { %v719_v34 = vmul.f32 %v602_v56, %v602_v56  ;;  %v770_v35 = vsel %vm627_vm8, %v718_v27, 0.0 }
  0xe3   : > { %v652_v39 = vadd.f32 %v651_v17, %v650_v36  ;;  %v751_v40 = vadd.f32 %v750_v37, %v749_v4  ;;  %v604_v29 = vpop.f32.mrf.mxu2  ;;  %v671_v4 = vsel %vm627_vm8, %v602_v56, 0.0  ;;  %v725_v56 = vmul.f32 %v1389_v46, %v1389_v46 }
  0xe4   : > { %v720_v36 = vmul.f32 %v604_v29, %v604_v29  ;;  %v772_v38 = vsel %vm627_vm8, %v719_v34, 0.0 }
  0xe5   : > { %v654_v20 = vadd.f32 %v653_v44, %v652_v39  ;;  %v753_v3 = vadd.f32 %v752_v42, %v751_v40  ;;  %v673_v39 = vsel %vm627_vm8, %v604_v29, 0.0  ;;  %v622_v33 = vpop.f32.mrf.mxu3  ;;  %v675_v42 = vsel %vm627_vm8, %v1334_v21, 0.0 }
  0xe6   : > { %v722_v44 = vmul.f32 %v1340_v26, %v1340_v26  ;;  %v774_v45 = vsel %vm627_vm8, %v720_v36, 0.0  ;;  %v679_v21 = vsel %vm627_vm8, %v1353_v48, 0.0  ;;  %v683_v48 = vsel %vm627_vm8, %v1389_v46, 0.0 }
  0xe7   : > { %v656_v51 = vadd.f32 %v655_v49, %v654_v20  ;;  %v755_v24 = vadd.f32 %v754_v47, %v753_v3  ;;  %v776_v47 = vsel %vm627_vm8, %v721_v58, 0.0  ;;  %v677_v49 = vsel %vm627_vm8, %v1340_v26, 0.0 }
  0xe8   : > { %v778_v52 = vsel %vm627_vm8, %v722_v44, 0.0  ;;  %v681_v26 = vsel %vm627_vm8, %v1367_v13, 0.0  ;;  %v784_v1 = vsel %vm627_vm8, %v725_v56, 0.0  ;;  %v687_v7 = vsel %vm627_vm8, %v622_v33, 0.0 }
  0xe9   : > { %v757_v43 = vadd.f32 %v756_v53, %v755_v24  ;;  %v658_v55 = vadd.f32 %v657_v54, %v656_v51  ;;  %v724_v53 = vmul.f32 %v1367_v13, %v1367_v13  ;;  %v727_v13 = vmul.f32 %v622_v33, %v622_v33 }
  0xeb   : > { %v660_v61 = vadd.f32 %v659_v57, %v658_v55  ;;  %v759_v62 = vadd.f32 %v758_v60, %v757_v43  ;;  %v780_v55 = vsel %vm627_vm8, %v723_v50, 0.0  ;;  %v782_v60 = vsel %vm627_vm8, %v724_v53, 0.0 }
  0xed   : > { %v662_v2 = vadd.f32 %v661_v0, %v660_v61  ;;  %v761_v5 = vadd.f32 %v760_v63, %v759_v62  ;;  %v726_v61 = vmul.f32 %v619_v10, %v619_v10  ;;  %v624_v0 = vpop.f32.mrf.mxu3 }
  0xef   : > { %v664_v8 = vadd.f32 %v663_v15, %v662_v2  ;;  %v763_v9 = vadd.f32 %v762_v6, %v761_v5  ;;  %v685_v2 = vsel %vm627_vm8, %v619_v10, 0.0  ;;  %v786_v15 = vsel %vm627_vm8, %v726_v61, 0.0 }
  0xf1   : > { %v765_v18 = vadd.f32 %v764_v11, %v763_v9  ;;  %v666_v22 = vadd.f32 %v665_v19, %v664_v8  ;;  %v728_v8 = vmul.f32 %v624_v0, %v624_v0  ;;  %v788_v11 = vsel %vm627_vm8, %v727_v13, 0.0 }
  0xf2   : > { %v689_v19 = vsel %vm627_vm8, %v624_v0, 0.0 }
  0xf3   : > { %v668_v12 = vadd.f32 %v667_v23, %v666_v22  ;;  %v767_v28 = vadd.f32 %v766_v25, %v765_v18  ;;  %v790_v10 = vsel %vm627_vm8, %v728_v8, 0.0 }
  0xf5   : > { %v670_v31 = vadd.f32 %v669_v32, %v668_v12  ;;  %v769_v14 = vadd.f32 %v768_v30, %v767_v28 }
  0xf7   : > { %v771_v37 = vadd.f32 %v770_v35, %v769_v14  ;;  %v672_v17 = vadd.f32 %v671_v4, %v670_v31 }
  0xf9   : > { %v773_v40 = vadd.f32 %v772_v38, %v771_v37  ;;  %v674_v41 = vadd.f32 %v673_v39, %v672_v17 }
  0xfb   : > { %v676_v20 = vadd.f32 %v675_v42, %v674_v41  ;;  %v775_v3 = vadd.f32 %v774_v45, %v773_v40 }
  0xfd   : > { %v678_v51 = vadd.f32 %v677_v49, %v676_v20  ;;  %v777_v24 = vadd.f32 %v776_v47, %v775_v3 }
  0xff   : > { %v680_v54 = vadd.f32 %v679_v21, %v678_v51  ;;  %v779_v43 = vadd.f32 %v778_v52, %v777_v24 }
 0x101   : > { %v781_v57 = vadd.f32 %v780_v55, %v779_v43  ;;  %v682_v59 = vadd.f32 %v681_v26, %v680_v54 }
 0x103   : > { %v684_v62 = vadd.f32 %v683_v48, %v682_v59  ;;  %v783_v63 = vadd.f32 %v782_v60, %v781_v57 }
 0x105   : > { %v686_v5 = vadd.f32 %v685_v2, %v684_v62  ;;  %v785_v6 = vadd.f32 %v784_v1, %v783_v63 }
 0x107   : > { %v787_v9 = vadd.f32 %v786_v15, %v785_v6  ;;  %v688_v46 = vadd.f32 %v687_v7, %v686_v5 }
 0x109   : > { %v789_v16 = vadd.f32 %v788_v11, %v787_v9  ;;  %v690_v18 = vadd.f32 %v689_v19, %v688_v46 }
 0x10b   : > { %v691_v22 = vrot.slane %v690_v18, 4  ;;  %v791_v25 = vadd.f32 %v790_v10, %v789_v16 }
 0x10d   : > { %v692_v23 = vadd.f32 %v691_v22, %v690_v18  ;;  %v792_v27 = vrot.slane %v791_v25, 4 }
 0x10f   : > { %v693_v12 = vrot.slane %v692_v23, 2  ;;  %v793_v28 = vadd.f32 %v792_v27, %v791_v25 }
 0x111   : > { %v694_v29 = vadd.f32 %v693_v12, %v692_v23  ;;  %v794_v30 = vrot.slane %v793_v28, 2 }
 0x113   : > { %v695_v32 = vrot.slane %v694_v29, 1  ;;  %v795_v34 = vadd.f32 %v794_v30, %v793_v28 }
 0x115   : > { %v796_v31 = vrot.slane %v795_v34, 1  ;;  %v696_v14 = vadd.f32 %v695_v32, %v694_v29 }
 0x117   : > { %v797_v35 = vadd.f32 %v796_v31, %v795_v34 }
 0x119   : > { %v799_v4 = vsel %vm798_vm5, %v696_v14, %v797_v35 }
 0x11a   : > { %801 = vst.msk [vmem:[%s137_s7] sm:$0x3] %vm800_vm6, %v799_v4 }
 0x11b   : > { %974 = shalt.err (!%p971_p3)
}
 0x11c   : > { %908 = dma.vmem_to_hbm [thread:$0]  (%p1064_p5), %s816_s8, 32, %s818_s14, %s803_s13  }
 0x11d PF: > { %p914_p4 = scmp.ge.s32.totalorder %s1009_s12, 2  ;;  %s829_s26 = sand.u32 1, %s997_s9  }
 0x11e   : > { %s830_s27 = scalar_lea.sflag [#allocation3], %s829_s26 }
 0x11f   : > { %p911_p7 = pnand %p914_p4, %p1068_p6 }
 0x121   : > { %p912_p8 = pneg %p911_p7 }
 0x123   : > { %992 = dma.done.wait (%p912_p8), %s830_s27, 32  }
 0x124   : > { %994 = vsyncadd (%p912_p8), %s830_s27, 4294967264  ;;  %p12_p9 = scmp.ge.s32.totalorder %s1051_s15, 4   ;;  %s1533_s9 = smov %s1001_s10 }
 0x125   : > { %s1534_s10 = smov %s1005_s11  ;;  %s1535_s11 = smov %s1062_s18 }
 0x126   : > { %s1536_s12 = smov %s1051_s15  ;;  %14 = sbr.rel (!%p12_p9) target bundleno = 3 (0x3), region = 63 }
 0x12b   :  { %836 = vsyncpa [#allocation3], 1 }
 0x12c   :  { %838 = vsyncpa [#allocation3 + $0x1], 1 }

</bundles_post_ra>
